<compile_context>
chip_gen: v7x
topology: tpu7x:2x2x1
jax: 0.10.0
libtpu: 0.0.40
codegen_flags: <defaults>
</compile_context>

<pallas_src>
import functools

import jax
import jax.numpy as jnp
from jax import lax
from jax.experimental import pallas as pl
from jax.experimental.pallas import tpu as pltpu


def _round_up(x: int, m: int) -> int:
    return ((x + m - 1) // m) * m


def attention_kernel(
    feat_ref,     # (TB, TL, E)  features tile (compute dtype: bf16 or f32)
    dec_ref,      # (TB, D)      decoder hidden state (compute dtype)
    uw_ref,       # (E, A)       enc_U weight, pre-transposed (compute dtype)
    ub_ref,       # (1, A)       enc_U bias (f32)
    ww_ref,       # (D, A)       dec_W weight, pre-transposed (compute dtype)
    wb_ref,       # (1, A)       dec_W bias (f32)
    aw_ref,       # (1, A)       full_A weight row (f32)
    w_out_ref,    # (TB, Lp)     attention weights (f32), resident across the L grid axis
    ctx_out_ref,  # (TB, E)      context (f32), resident across the L grid axis
    m_sc,         # (TB, 1)  f32 running max
    d_sc,         # (TB, 1)  f32 running softmax denominator
    ctx_sc,       # (TB, E)  f32 running (un-normalized) context accumulator
    s_sc,         # (num_l_blocks, TB, TL) f32 raw-score stash (for exact final weights)
    *,
    seq_len: int,        # true L before padding
    num_l_blocks: int,   # static number of L grid steps
    needs_l_mask: bool,  # whether L was padded up to Lp
    tanh_dtype,          # dtype for the tanh (bf16 relieves the single EUP slot on v6e/v7x)
):
    TB, TL, E = feat_ref.shape
    A = uw_ref.shape[1]
    l = pl.program_id(1)

    @pl.when(l == 0)
    def _init():
        m_sc[...] = jnp.full_like(m_sc, -jnp.inf)
        d_sc[...] = jnp.zeros_like(d_sc)
        ctx_sc[...] = jnp.zeros_like(ctx_sc)

    feat = feat_ref[...]                                    # (TB, TL, E), compute dtype

    # enc_U(features): one flattened (TB*TL, E) @ (E, A) MXU matmul, f32 accumulation.
    # TB and TL are multiples of 8, so the reshape is a pure layout reinterpretation.
    enc = jnp.dot(feat.reshape(TB * TL, E), uw_ref[...],
                  preferred_element_type=jnp.float32)
    enc = enc.reshape(TB, TL, A) + ub_ref[...]              # (TB, TL, A) f32

    # dec_W(decoder_hidden_state): (TB, D) @ (D, A) -> (TB, A).  Tiny; recomputed per L step.
    dec_attn = jnp.dot(dec_ref[...], ww_ref[...],
                       preferred_element_type=jnp.float32) + wb_ref[...]

    pre = enc + dec_attn[:, None, :]                        # (TB, TL, A) f32
    combined = jnp.tanh(pre.astype(tanh_dtype)).astype(jnp.float32)

    # full_A: VPU multiply + lane reduction over A (no N=1 MXU matvec).  full_A bias omitted:
    # it shifts every score equally and softmax is shift-invariant -> outputs unchanged.
    scores = jnp.sum(combined * aw_ref[...], axis=-1)       # (TB, TL) f32, lane-dense

    if needs_l_mask:
        col = lax.broadcasted_iota(jnp.int32, (TB, TL), 1) + l * TL
        scores = jnp.where(col < seq_len, scores, -jnp.inf)

    # ---- flash-style online softmax + context accumulation over the L grid axis ----
    m_prev = m_sc[...]
    m_new = jnp.maximum(m_prev, jnp.max(scores, axis=-1, keepdims=True))   # (TB, 1)
    alpha = jnp.exp(m_prev - m_new)                                        # (TB, 1)
    p = jnp.exp(scores - m_new)                                            # (TB, TL)
    d_sc[...] = alpha * d_sc[...] + jnp.sum(p, axis=-1, keepdims=True)
    # Context numerator: p promotes feat bf16->f32 elementwise (no separate full-tile f32 copy
    # of the features); the temporary is bounded by TB*TL*E thanks to the L tiling.
    # TODO(synk): if the bundle dump shows this materializing, switch to a batched MXU matvec
    # (einsum 'bql,ble->bqe') or an 8-row chunked accumulation.
    ctx_sc[...] = alpha * ctx_sc[...] + jnp.sum(p[:, :, None] * feat, axis=1)
    m_sc[...] = m_new

    # Stash this chunk's raw (masked) scores; dynamic index is on the *leading* axis only.
    s_sc[l] = scores

    @pl.when(l == num_l_blocks - 1)
    def _finalize():
        inv_d = 1.0 / d_sc[...]          # exact normalization; once per batch tile, cost is nil
        m_fin = m_sc[...]
        # num_l_blocks is a trace-time constant, so every lane-axis store below is a static
        # slice (unmasked, full-width).
        for j in range(num_l_blocks):
            w_out_ref[:, j * TL:(j + 1) * TL] = (
                jnp.exp(s_sc[j] - m_fin) * inv_d).astype(w_out_ref.dtype)
        ctx_out_ref[...] = (ctx_sc[...] * inv_d).astype(ctx_out_ref.dtype)


def attention_forward(features, decoder_hidden_state, params, *,
                      batch_tile=None, seq_tile=None,
                      compute_dtype=jnp.bfloat16, tanh_dtype=jnp.float32):
    """features: (B, L, E), decoder_hidden_state: (B, D) -> (attn_weight (B, L), context (B, E)).

    compute_dtype: dtype for features / decoder state / enc_U / dec_W weights (bf16 default on
      every generation; the kernel is HBM-bound at realistic shapes and all accumulation is f32).
    tanh_dtype: pass jnp.bfloat16 on v6e/v7x to double EUP tanh throughput; keep f32 on v5e.
    """
    B, L, E = features.shape
    D = decoder_hidden_state.shape[1]
    A = params["enc_U_w"].shape[0]           # torch nn.Linear weight is (out, in)

    cdt = jnp.dtype(features.dtype) if compute_dtype is None else jnp.dtype(compute_dtype)
    itemsize = cdt.itemsize

    # ---- L tile: multiple of 8 (sublane rule / layout-pure reshape), capped so the feature
    # block stays modest; whole L when it is short. ----
    if seq_tile is None:
        seq_tile = min(_round_up(L, 8), 512)
    TL = max(8, _round_up(int(seq_tile), 8))
    Lp = _round_up(L, TL)
    num_l_blocks = Lp // TL

    # ---- batch tile: multiple of 8, sized against VMEM. ~2 MiB of features per block
    # (double-buffered -> ~4 MiB) plus ~3x (TB, TL, A) f32 temporaries stays well under
    # v7x's 64 MiB physical VMEM; v5e/v6e (128 MiB) have ample headroom. ----
    if batch_tile is None:
        target_bytes = 2 * 1024 * 1024
        tb = target_bytes // max(1, TL * E * itemsize)
        tb = max(8, min(256, (tb // 8) * 8))
        tb = min(tb, _round_up(B, 8))                       # never bigger than the padded batch
        if B >= 16:
            # keep >= 2 batch grid steps so the "parallel" axis splits across both v7x cores.
            tb = min(tb, _round_up(pl.cdiv(B, 2), 8))
        batch_tile = tb
    TB = max(8, _round_up(int(batch_tile), 8))
    Bp = _round_up(B, TB)

    # ---- pad batch / sequence (padded rows produce garbage that is sliced off; padded L
    # positions are masked to -inf inside the kernel). ----
    if Bp != B:
        features = jnp.pad(features, ((0, Bp - B), (0, 0), (0, 0)))
        decoder_hidden_state = jnp.pad(decoder_hidden_state, ((0, Bp - B), (0, 0)))
    if Lp != L:
        features = jnp.pad(features, ((0, 0), (0, Lp - L), (0, 0)))

    feat = features.astype(cdt)
    dec = decoder_hidden_state.astype(cdt)
    uw = params["enc_U_w"].T.astype(cdt)                    # (E, A)
    ww = params["dec_W_w"].T.astype(cdt)                    # (D, A)
    ub = params["enc_U_b"].reshape(1, A).astype(jnp.float32)
    wb = params["dec_W_b"].reshape(1, A).astype(jnp.float32)
    aw = params["full_A_w"].reshape(1, A).astype(jnp.float32)
    # full_A_b intentionally not passed (softmax shift-invariance).

    # ---- explicit VMEM budget (scoped default is only 16 MiB on v5e / 32 MiB on v6e & v7x) ----
    feat_block_bytes = TB * TL * E * itemsize
    weight_bytes = (E * A + D * A) * itemsize + 3 * A * 4
    est = (2 * feat_block_bytes                # double-buffered feature blocks
           + 2 * TB * D * itemsize             # decoder hidden
           + 2 * weight_bytes                  # weights / biases (conservatively x2)
           + 2 * (TB * Lp + TB * E) * 4        # resident outputs
           + TB * (E + 2) * 4 + TB * Lp * 4    # scratch accumulators + raw-score stash
           + 3 * TB * TL * A * 4)              # in-kernel f32 temporaries (enc / tanh / scores)
    vmem_limit = int(min(100 * 1024 * 1024, max(32 * 1024 * 1024, int(est * 1.25))))

    kernel = functools.partial(
        attention_kernel,
        seq_len=L,
        num_l_blocks=num_l_blocks,
        needs_l_mask=(Lp != L),
        tanh_dtype=jnp.dtype(tanh_dtype),
    )

    grid_spec = pltpu.PrefetchScalarGridSpec(
        num_scalar_prefetch=0,
        grid=(Bp // TB, num_l_blocks),
        in_specs=[
            pl.BlockSpec((TB, TL, E), lambda b, l: (b, l, 0)),   # features (batch x L tile)
            pl.BlockSpec((TB, D),     lambda b, l: (b, 0)),      # decoder hidden (per batch tile)
            pl.BlockSpec((E, A),      lambda b, l: (0, 0)),      # enc_U weight (constant block)
            pl.BlockSpec((1, A),      lambda b, l: (0, 0)),      # enc_U bias
            pl.BlockSpec((D, A),      lambda b, l: (0, 0)),      # dec_W weight
            pl.BlockSpec((1, A),      lambda b, l: (0, 0)),      # dec_W bias
            pl.BlockSpec((1, A),      lambda b, l: (0, 0)),      # full_A weight row
        ],
        out_specs=[
            pl.BlockSpec((TB, Lp), lambda b, l: (b, 0)),         # attn weights (lane-dense,
            pl.BlockSpec((TB, E),  lambda b, l: (b, 0)),         #  resident over L) / context
        ],
        scratch_shapes=[
            pltpu.VMEM((TB, 1), jnp.float32),                    # running max
            pltpu.VMEM((TB, 1), jnp.float32),                    # running denominator
            pltpu.VMEM((TB, E), jnp.float32),                    # running context numerator
            pltpu.VMEM((num_l_blocks, TB, TL), jnp.float32),     # raw score stash
        ],
    )

    attn_weight, context = pl.pallas_call(
        kernel,
        out_shape=(
            jax.ShapeDtypeStruct((Bp, Lp), jnp.float32),
            jax.ShapeDtypeStruct((Bp, E), jnp.float32),
        ),
        grid_spec=grid_spec,
        compiler_params=pltpu.CompilerParams(
            dimension_semantics=("parallel", "arbitrary"),
            vmem_limit_bytes=vmem_limit,
        ),
    )(feat, dec, uw, ub, ww, wb, aw)

    return attn_weight[:B, :L], context[:B]


def attention_ref(features, decoder_hidden_state, params):
    """Pure-JAX reference mirroring the PyTorch forward exactly (including full_A bias)."""
    dec = decoder_hidden_state[:, None, :]                                    # (B, 1, D)
    enc_attn = features @ params["enc_U_w"].T + params["enc_U_b"]             # (B, L, A)
    dec_attn = dec @ params["dec_W_w"].T + params["dec_W_b"]                  # (B, 1, A)
    combined = jnp.tanh(enc_attn + dec_attn)
    scores = (combined @ params["full_A_w"].T + params["full_A_b"])[:, :, 0]  # (B, L)
    attn_weight = jax.nn.softmax(scores, axis=1)
    context = jnp.sum(attn_weight[:, :, None] * features, axis=1)             # (B, E)
    return attn_weight, context


if __name__ == "__main__":
    enc_hidden_size = 32
    dec_hidden_size = 32
    attn_size = 32

    key = jax.random.PRNGKey(0)
    k = jax.random.split(key, 12)

    # torch nn.Linear shapes: weight (out, in), bias (out,)
    params = {
        "enc_U_w": jax.random.normal(k[0], (attn_size, enc_hidden_size), jnp.float32) * 0.1,
        "enc_U_b": jax.random.normal(k[1], (attn_size,), jnp.float32) * 0.1,
        "dec_W_w": jax.random.normal(k[2], (attn_size, dec_hidden_size), jnp.float32) * 0.1,
        "dec_W_b": jax.random.normal(k[3], (attn_size,), jnp.float32) * 0.1,
        "full_A_w": jax.random.normal(k[4], (1, attn_size), jnp.float32) * 0.1,
        "full_A_b": jax.random.normal(k[5], (1,), jnp.float32) * 0.1,
    }

    # ---- Test 1: module-default small shapes (single L block). ----
    B1, L1 = 2, 8
    feats1 = jax.random.normal(k[6], (B1, L1, enc_hidden_size), jnp.float32)
    dec1 = jax.random.normal(k[7], (B1, dec_hidden_size), jnp.float32)
    ref_w1, ref_c1 = attention_ref(feats1, dec1, params)

    # Default path: bf16 features/weights (HBM-roofline win on v5e/v6e/v7x), f32 accumulation.
    w1, c1 = attention_forward(feats1, dec1, params)
    jax.block_until_ready((w1, c1))
    assert w1.shape == (B1, L1) and c1.shape == (B1, enc_hidden_size)
    assert jnp.allclose(w1, ref_w1, atol=5e-2, rtol=5e-2), "attn_weight mismatch (bf16 default)"
    assert jnp.allclose(c1, ref_c1, atol=5e-2, rtol=5e-2), "context mismatch (bf16 default)"
    assert jnp.allclose(jnp.sum(w1, axis=1), 1.0, atol=1e-3), "weights not normalized"

    # Full-precision path.
    w1f, c1f = attention_forward(feats1, dec1, params, compute_dtype=jnp.float32)
    jax.block_until_ready((w1f, c1f))
    assert jnp.allclose(w1f, ref_w1, atol=5e-3, rtol=5e-3), "attn_weight mismatch (f32)"
    assert jnp.allclose(c1f, ref_c1, atol=5e-3, rtol=5e-3), "context mismatch (f32)"

    # ---- Test 2: batch padding + L padding + multi-block online softmax over the L axis. ----
    B2, L2 = 4, 20
    feats2 = jax.random.normal(k[8], (B2, L2, enc_hidden_size), jnp.float32)
    dec2 = jax.random.normal(k[9], (B2, dec_hidden_size), jnp.float32)
    ref_w2, ref_c2 = attention_ref(feats2, dec2, params)

    w2, c2 = attention_forward(feats2, dec2, params, compute_dtype=jnp.float32, seq_tile=8)
    jax.block_until_ready((w2, c2))
    assert w2.shape == (B2, L2) and c2.shape == (B2, enc_hidden_size)
    assert jnp.allclose(w2, ref_w2, atol=5e-3, rtol=5e-3), "attn_weight mismatch (f32, L-tiled)"
    assert jnp.allclose(c2, ref_c2, atol=5e-3, rtol=5e-3), "context mismatch (f32, L-tiled)"

    # bf16 features + bf16 tanh (EUP relief on v6e/v7x), L-tiled online softmax path.
    w2b, c2b = attention_forward(feats2, dec2, params, seq_tile=8,
                                 compute_dtype=jnp.bfloat16, tanh_dtype=jnp.bfloat16)
    jax.block_until_ready((w2b, c2b))
    assert jnp.allclose(w2b, ref_w2, atol=5e-2, rtol=5e-2), "attn_weight mismatch (bf16, L-tiled)"
    assert jnp.allclose(c2b, ref_c2, atol=5e-2, rtol=5e-2), "context mismatch (bf16, L-tiled)"

    print("KERNEL_OK")
</pallas_src>

<mosaic_0001>
module attributes {stable_mosaic.version = 11 : i64} {
  func.func @attention_kernel(%arg0: i32, %arg1: i32, %arg2: memref<8x8x32xbf16, #tpu.memory_space<vmem>>, %arg3: memref<8x32xbf16, #tpu.memory_space<vmem>>, %arg4: memref<32x32xbf16, #tpu.memory_space<vmem>>, %arg5: memref<1x32xf32, #tpu.memory_space<vmem>>, %arg6: memref<32x32xbf16, #tpu.memory_space<vmem>>, %arg7: memref<1x32xf32, #tpu.memory_space<vmem>>, %arg8: memref<1x32xf32, #tpu.memory_space<vmem>>, %arg9: memref<8x8xf32, #tpu.memory_space<vmem>>, %arg10: memref<8x32xf32, #tpu.memory_space<vmem>>, %arg11: memref<8x1xf32, #tpu.memory_space<vmem>>, %arg12: memref<8x1xf32, #tpu.memory_space<vmem>>, %arg13: memref<8x32xf32, #tpu.memory_space<vmem>>, %arg14: memref<1x8x8xf32, #tpu.memory_space<vmem>>) attributes {dimension_semantics = [#tpu.dimension_semantics<parallel>, #tpu.dimension_semantics<arbitrary>], iteration_bounds = array<i64: 1, 1>, scalar_prefetch = 0 : i64, scratch_operands = 4 : i64, tpu.core_type = #tpu.core_type<tc>, window_params = [{transform_indices = @transform_0, window_bounds = array<i64: 8, 8, 32>}, {transform_indices = @transform_1, window_bounds = array<i64: 8, 32>}, {pipeline_mode = #tpu.pipeline_mode<synchronous>, transform_indices = @transform_2, window_bounds = array<i64: 32, 32>}, {pipeline_mode = #tpu.pipeline_mode<synchronous>, transform_indices = @transform_3, window_bounds = array<i64: 1, 32>}, {pipeline_mode = #tpu.pipeline_mode<synchronous>, transform_indices = @transform_4, window_bounds = array<i64: 32, 32>}, {pipeline_mode = #tpu.pipeline_mode<synchronous>, transform_indices = @transform_5, window_bounds = array<i64: 1, 32>}, {pipeline_mode = #tpu.pipeline_mode<synchronous>, transform_indices = @transform_6, window_bounds = array<i64: 1, 32>}, {transform_indices = @transform_7, window_bounds = array<i64: 8, 8>}, {transform_indices = @transform_8, window_bounds = array<i64: 8, 32>}]} {
    %c0_i32 = arith.constant 0 : i32
    %0 = arith.cmpi eq, %arg1, %c0_i32 : i32
    %1 = arith.extui %0 : i1 to i32
    %c0_i32_0 = arith.constant 0 : i32
    %2 = arith.cmpi ne, %1, %c0_i32_0 : i32
    scf.if %2 {
      %cst_36 = arith.constant 0xFF800000 : f32
      %60 = vector.broadcast %cst_36 : f32 to vector<8x1xf32>
      %c0_37 = arith.constant 0 : index
      %c0_38 = arith.constant 0 : index
      %61 = vector.load %arg11[%c0_37, %c0_38] : memref<8x1xf32, #tpu.memory_space<vmem>>, vector<8x1xf32>
      tpu.vector_store %arg11[%c0_37, %c0_38], %60 {strides = array<i32>} : memref<8x1xf32, #tpu.memory_space<vmem>>, vector<8x1xf32>,
      %cst_39 = arith.constant 0.000000e+00 : f32
      %62 = vector.broadcast %cst_39 : f32 to vector<8x1xf32>
      %c0_40 = arith.constant 0 : index
      %c0_41 = arith.constant 0 : index
      %63 = vector.load %arg12[%c0_40, %c0_41] : memref<8x1xf32, #tpu.memory_space<vmem>>, vector<8x1xf32>
      tpu.vector_store %arg12[%c0_40, %c0_41], %62 {strides = array<i32>} : memref<8x1xf32, #tpu.memory_space<vmem>>, vector<8x1xf32>,
      %cst_42 = arith.constant 0.000000e+00 : f32
      %64 = vector.broadcast %cst_42 : f32 to vector<8x32xf32>
      %c0_43 = arith.constant 0 : index
      %c0_44 = arith.constant 0 : index
      %65 = vector.load %arg13[%c0_43, %c0_44] : memref<8x32xf32, #tpu.memory_space<vmem>>, vector<8x32xf32>
      tpu.vector_store %arg13[%c0_43, %c0_44], %64 {strides = array<i32>} : memref<8x32xf32, #tpu.memory_space<vmem>>, vector<8x32xf32>,
    } else {
    }
    %c0 = arith.constant 0 : index
    %c0_1 = arith.constant 0 : index
    %c0_2 = arith.constant 0 : index
    %3 = vector.load %arg2[%c0, %c0_1, %c0_2] : memref<8x8x32xbf16, #tpu.memory_space<vmem>>, vector<8x8x32xbf16>
    %4 = vector.shape_cast %3 : vector<8x8x32xbf16> to vector<64x32xbf16>
    %c0_3 = arith.constant 0 : index
    %c0_4 = arith.constant 0 : index
    %5 = vector.load %arg4[%c0_3, %c0_4] : memref<32x32xbf16, #tpu.memory_space<vmem>>, vector<32x32xbf16>
    %cst = arith.constant dense<0.000000e+00> : vector<64x32xf32>
    %6 = tpu.matmul %4, %5, %cst {dimension_numbers = #tpu.dot_dimension_numbers<[1], [0], [0], [1], [0, 0, 1, 1], [], []>} : vector<64x32xbf16>, vector<32x32xbf16>, vector<64x32xf32> -> vector<64x32xf32>
    %7 = vector.shape_cast %6 : vector<64x32xf32> to vector<8x8x32xf32>
    %c0_5 = arith.constant 0 : index
    %c0_6 = arith.constant 0 : index
    %8 = vector.load %arg5[%c0_5, %c0_6] : memref<1x32xf32, #tpu.memory_space<vmem>>, vector<1x32xf32>
    %9 = vector.shape_cast %8 : vector<1x32xf32> to vector<1x1x32xf32>
    %10 = vector.broadcast %9 : vector<1x1x32xf32> to vector<8x8x32xf32>
    %11 = arith.addf %7, %10 : vector<8x8x32xf32>
    %c0_7 = arith.constant 0 : index
    %c0_8 = arith.constant 0 : index
    %12 = vector.load %arg3[%c0_7, %c0_8] : memref<8x32xbf16, #tpu.memory_space<vmem>>, vector<8x32xbf16>
    %c0_9 = arith.constant 0 : index
    %c0_10 = arith.constant 0 : index
    %13 = vector.load %arg6[%c0_9, %c0_10] : memref<32x32xbf16, #tpu.memory_space<vmem>>, vector<32x32xbf16>
    %cst_11 = arith.constant dense<0.000000e+00> : vector<8x32xf32>
    %14 = tpu.matmul %12, %13, %cst_11 {dimension_numbers = #tpu.dot_dimension_numbers<[1], [0], [0], [1], [0, 0, 1, 1], [], []>} : vector<8x32xbf16>, vector<32x32xbf16>, vector<8x32xf32> -> vector<8x32xf32>
    %c0_12 = arith.constant 0 : index
    %c0_13 = arith.constant 0 : index
    %15 = vector.load %arg7[%c0_12, %c0_13] : memref<1x32xf32, #tpu.memory_space<vmem>>, vector<1x32xf32>
    %16 = vector.broadcast %15 : vector<1x32xf32> to vector<8x32xf32>
    %17 = arith.addf %14, %16 : vector<8x32xf32>
    %18 = vector.shape_cast %17 : vector<8x32xf32> to vector<8x1x32xf32>
    %19 = vector.broadcast %18 : vector<8x1x32xf32> to vector<8x8x32xf32>
    %20 = arith.addf %11, %19 : vector<8x8x32xf32>
    %21 = math.tanh %20 : vector<8x8x32xf32>
    %c0_14 = arith.constant 0 : index
    %c0_15 = arith.constant 0 : index
    %22 = vector.load %arg8[%c0_14, %c0_15] : memref<1x32xf32, #tpu.memory_space<vmem>>, vector<1x32xf32>
    %23 = vector.shape_cast %22 : vector<1x32xf32> to vector<1x1x32xf32>
    %24 = vector.broadcast %23 : vector<1x1x32xf32> to vector<8x8x32xf32>
    %25 = arith.mulf %21, %24 : vector<8x8x32xf32>
    %cst_16 = arith.constant dense<0.000000e+00> : vector<8x8xf32>
    %26 = vector.multi_reduction <add>, %25, %cst_16 [2] : vector<8x8x32xf32> to vector<8x8xf32>
    %c0_17 = arith.constant 0 : index
    %c0_18 = arith.constant 0 : index
    %27 = vector.load %arg11[%c0_17, %c0_18] : memref<8x1xf32, #tpu.memory_space<vmem>>, vector<8x1xf32>
    %cst_19 = arith.constant dense<0xFF800000> : vector<8xf32>
    %28 = vector.multi_reduction <maximumf>, %26, %cst_19 [1] : vector<8x8xf32> to vector<8xf32>
    %29 = vector.shape_cast %28 : vector<8xf32> to vector<8x1xf32>
    %30 = arith.maximumf %27, %29 : vector<8x1xf32>
    %31 = arith.subf %27, %30 : vector<8x1xf32>
    %32 = math.exp %31 : vector<8x1xf32>
    %33 = vector.broadcast %30 : vector<8x1xf32> to vector<8x8xf32>
    %34 = arith.subf %26, %33 : vector<8x8xf32>
    %35 = math.exp %34 : vector<8x8xf32>
    %c0_20 = arith.constant 0 : index
    %c0_21 = arith.constant 0 : index
    %36 = vector.load %arg12[%c0_20, %c0_21] : memref<8x1xf32, #tpu.memory_space<vmem>>, vector<8x1xf32>
    %37 = arith.mulf %32, %36 : vector<8x1xf32>
    %cst_22 = arith.constant dense<0.000000e+00> : vector<8xf32>
    %38 = vector.multi_reduction <add>, %35, %cst_22 [1] : vector<8x8xf32> to vector<8xf32>
    %39 = vector.shape_cast %38 : vector<8xf32> to vector<8x1xf32>
    %40 = arith.addf %37, %39 : vector<8x1xf32>
    %c0_23 = arith.constant 0 : index
    %c0_24 = arith.constant 0 : index
    %41 = vector.load %arg12[%c0_23, %c0_24] : memref<8x1xf32, #tpu.memory_space<vmem>>, vector<8x1xf32>
    tpu.vector_store %arg12[%c0_23, %c0_24], %40 {strides = array<i32>} : memref<8x1xf32, #tpu.memory_space<vmem>>, vector<8x1xf32>,
    %c0_25 = arith.constant 0 : index
    %c0_26 = arith.constant 0 : index
    %42 = vector.load %arg13[%c0_25, %c0_26] : memref<8x32xf32, #tpu.memory_space<vmem>>, vector<8x32xf32>
    %43 = vector.broadcast %32 : vector<8x1xf32> to vector<8x32xf32>
    %44 = arith.mulf %43, %42 : vector<8x32xf32>
    %45 = vector.shape_cast %35 : vector<8x8xf32> to vector<8x8x1xf32>
    %46 = arith.extf %3 : vector<8x8x32xbf16> to vector<8x8x32xf32>
    %47 = vector.broadcast %45 : vector<8x8x1xf32> to vector<8x8x32xf32>
    %48 = arith.mulf %47, %46 : vector<8x8x32xf32>
    %cst_27 = arith.constant dense<0.000000e+00> : vector<8x32xf32>
    %49 = vector.multi_reduction <add>, %48, %cst_27 [1] : vector<8x8x32xf32> to vector<8x32xf32>
    %50 = arith.addf %44, %49 : vector<8x32xf32>
    %c0_28 = arith.constant 0 : index
    %c0_29 = arith.constant 0 : index
    %51 = vector.load %arg13[%c0_28, %c0_29] : memref<8x32xf32, #tpu.memory_space<vmem>>, vector<8x32xf32>
    tpu.vector_store %arg13[%c0_28, %c0_29], %50 {strides = array<i32>} : memref<8x32xf32, #tpu.memory_space<vmem>>, vector<8x32xf32>,
    %c0_30 = arith.constant 0 : index
    %c0_31 = arith.constant 0 : index
    %52 = vector.load %arg11[%c0_30, %c0_31] : memref<8x1xf32, #tpu.memory_space<vmem>>, vector<8x1xf32>
    tpu.vector_store %arg11[%c0_30, %c0_31], %30 {strides = array<i32>} : memref<8x1xf32, #tpu.memory_space<vmem>>, vector<8x1xf32>,
    %53 = arith.index_cast %arg1 : i32 to index
    %c0_32 = arith.constant 0 : index
    %c0_33 = arith.constant 0 : index
    %54 = vector.load %arg14[%53, %c0_32, %c0_33] : memref<1x8x8xf32, #tpu.memory_space<vmem>>, vector<1x8x8xf32>
    %55 = vector.shape_cast %54 : vector<1x8x8xf32> to vector<8x8xf32>
    %56 = vector.shape_cast %26 : vector<8x8xf32> to vector<1x8x8xf32>
    tpu.vector_store %arg14[%53, %c0_32, %c0_33], %56 {strides = array<i32>} : memref<1x8x8xf32, #tpu.memory_space<vmem>>, vector<1x8x8xf32>,
    %c0_i32_34 = arith.constant 0 : i32
    %57 = arith.cmpi eq, %arg1, %c0_i32_34 : i32
    %58 = arith.extui %57 : i1 to i32
    %c0_i32_35 = arith.constant 0 : i32
    %59 = arith.cmpi ne, %58, %c0_i32_35 : i32
    scf.if %59 {
      %c0_36 = arith.constant 0 : index
      %c0_37 = arith.constant 0 : index
      %60 = vector.load %arg12[%c0_36, %c0_37] : memref<8x1xf32, #tpu.memory_space<vmem>>, vector<8x1xf32>
      %cst_38 = arith.constant 1.000000e+00 : f32
      %61 = vector.broadcast %cst_38 : f32 to vector<8x1xf32>
      %62 = arith.divf %61, %60 : vector<8x1xf32>
      %c0_39 = arith.constant 0 : index
      %c0_40 = arith.constant 0 : index
      %63 = vector.load %arg11[%c0_39, %c0_40] : memref<8x1xf32, #tpu.memory_space<vmem>>, vector<8x1xf32>
      %c0_41 = arith.constant 0 : index
      %c0_42 = arith.constant 0 : index
      %c0_43 = arith.constant 0 : index
      %64 = vector.load %arg14[%c0_41, %c0_42, %c0_43] : memref<1x8x8xf32, #tpu.memory_space<vmem>>, vector<1x8x8xf32>
      %65 = vector.shape_cast %64 : vector<1x8x8xf32> to vector<8x8xf32>
      %66 = vector.broadcast %63 : vector<8x1xf32> to vector<8x8xf32>
      %67 = arith.subf %65, %66 : vector<8x8xf32>
      %68 = math.exp %67 : vector<8x8xf32>
      %69 = vector.broadcast %62 : vector<8x1xf32> to vector<8x8xf32>
      %70 = arith.mulf %68, %69 : vector<8x8xf32>
      %c0_44 = arith.constant 0 : index
      %c0_45 = arith.constant 0 : index
      %71 = vector.load %arg9[%c0_44, %c0_45] : memref<8x8xf32, #tpu.memory_space<vmem>>, vector<8x8xf32>
      tpu.vector_store %arg9[%c0_44, %c0_45], %70 {strides = array<i32>} : memref<8x8xf32, #tpu.memory_space<vmem>>, vector<8x8xf32>,
      %c0_46 = arith.constant 0 : index
      %c0_47 = arith.constant 0 : index
      %72 = vector.load %arg13[%c0_46, %c0_47] : memref<8x32xf32, #tpu.memory_space<vmem>>, vector<8x32xf32>
      %73 = vector.broadcast %62 : vector<8x1xf32> to vector<8x32xf32>
      %74 = arith.mulf %72, %73 : vector<8x32xf32>
      %c0_48 = arith.constant 0 : index
      %c0_49 = arith.constant 0 : index
      %75 = vector.load %arg10[%c0_48, %c0_49] : memref<8x32xf32, #tpu.memory_space<vmem>>, vector<8x32xf32>
      tpu.vector_store %arg10[%c0_48, %c0_49], %74 {strides = array<i32>} : memref<8x32xf32, #tpu.memory_space<vmem>>, vector<8x32xf32>,
    } else {
    }
    return
  }
  func.func @transform_0(%arg0: i32, %arg1: i32) -> (i32, i32, i32) {
    %c0_i32 = arith.constant 0 : i32
    %c0_i32_0 = arith.constant 0 : i32
    return %arg0, %arg1, %c0_i32 : i32, i32, i32
  }
  func.func @transform_1(%arg0: i32, %arg1: i32) -> (i32, i32) {
    %c0_i32 = arith.constant 0 : i32
    %c0_i32_0 = arith.constant 0 : i32
    return %arg0, %c0_i32 : i32, i32
  }
  func.func @transform_2(%arg0: i32, %arg1: i32) -> (i32, i32) {
    %c0_i32 = arith.constant 0 : i32
    %c0_i32_0 = arith.constant 0 : i32
    %c0_i32_1 = arith.constant 0 : i32
    return %c0_i32, %c0_i32_0 : i32, i32
  }
  func.func @transform_3(%arg0: i32, %arg1: i32) -> (i32, i32) {
    %c0_i32 = arith.constant 0 : i32
    %c0_i32_0 = arith.constant 0 : i32
    %c0_i32_1 = arith.constant 0 : i32
    return %c0_i32, %c0_i32_0 : i32, i32
  }
  func.func @transform_4(%arg0: i32, %arg1: i32) -> (i32, i32) {
    %c0_i32 = arith.constant 0 : i32
    %c0_i32_0 = arith.constant 0 : i32
    %c0_i32_1 = arith.constant 0 : i32
    return %c0_i32, %c0_i32_0 : i32, i32
  }
  func.func @transform_5(%arg0: i32, %arg1: i32) -> (i32, i32) {
    %c0_i32 = arith.constant 0 : i32
    %c0_i32_0 = arith.constant 0 : i32
    %c0_i32_1 = arith.constant 0 : i32
    return %c0_i32, %c0_i32_0 : i32, i32
  }
  func.func @transform_6(%arg0: i32, %arg1: i32) -> (i32, i32) {
    %c0_i32 = arith.constant 0 : i32
    %c0_i32_0 = arith.constant 0 : i32
    %c0_i32_1 = arith.constant 0 : i32
    return %c0_i32, %c0_i32_0 : i32, i32
  }
  func.func @transform_7(%arg0: i32, %arg1: i32) -> (i32, i32) {
    %c0_i32 = arith.constant 0 : i32
    %c0_i32_0 = arith.constant 0 : i32
    return %arg0, %c0_i32 : i32, i32
  }
  func.func @transform_8(%arg0: i32, %arg1: i32) -> (i32, i32) {
    %c0_i32 = arith.constant 0 : i32
    %c0_i32_0 = arith.constant 0 : i32
    return %arg0, %c0_i32 : i32, i32
  }
}

</mosaic_0001>

<bundles_post_ra>
// kernel: tpu_custom_call.1
= control target key start
LH: loop header
LB: loop body
LE: loop exit
PB: predicated region body
PF: predicated region fallthrough
CT: control target
= control target key end

     0   :  { %14 = vsyncpa [#allocation7], 0  ;;  %s1368_s0 = inlined_call_operand.hbm [shape: bf16[8,8,32], index: 0, kind: input, shape index: {}]   ;;  %s1369_s1 = inlined_call_operand.hbm [shape: bf16[8,32], index: 1, kind: input, shape index: {}]   ;;  %s1370_s2 = inlined_call_operand.hbm [shape: bf16[32,32], index: 2, kind: input, shape index: {}]   ;;  %s1371_s3 = inlined_call_operand.vmem [shape: f32[1,32], index: 3, kind: input, shape index: {}]   ;;  %s1372_s4 = inlined_call_operand.hbm [shape: bf16[32,32], index: 4, kind: input, shape index: {}]   ;;  %s1373_s5 = inlined_call_operand.vmem [shape: f32[1,32], index: 5, kind: input, shape index: {}]   ;;  %s1374_s6 = inlined_call_operand.vmem [shape: f32[1,32], index: 6, kind: input, shape index: {}]   ;;  %s1375_s7 = inlined_call_operand.hbm [shape: f32[8,8], index: 7, kind: output, shape index: {0}]   ;;  %s1376_s8 = inlined_call_operand.hbm [shape: f32[8,32], index: 8, kind: output, shape index: {1}]  }
   0x1   :  { %15 = vsyncpa [#allocation10], 0 }
   0x2   :  { %16 = vsyncpa [#allocation13], 0 }
   0x3   :  { %17 = vsyncpa [#allocation8], 0 }
   0x4   :  { %18 = vsyncpa [#allocation16], 0  ;;  %s1074_s27 = smov [#allocation9]   ;;  %s1075_s29 = smov [#allocation6]  }
   0x5   :  { %s37_s28 = sshll.u32 %s1074_s27, 4  ;;  %s24_s30 = sshll.u32 %s1075_s29, 4  ;;  %s38_s28 = int_to_ptr.vmem [resolvable:$true] %s37_s28  ;;  %s1132_s30 = int_to_ptr.vmem [resolvable:$true] %s24_s30 }
   0x6   :  { %s932_s11 = scalar_lea.hbm %s1369_s1, 64 }
   0x7   :  { %p933_p0 = scmp.ne.s32.totalorder %s1369_s1, %s932_s11  ;;  %p936_p1 = scmp.lt.u32.totalorder %s932_s11, %s1369_s1 }
   0x9   :  { %p938_p2 = pnand %p936_p1, %p933_p0 }
   0xb   :  { %941 = shalt.err (!%p938_p2)
}
   0xc   :  { %s942_s16 = scalar_lea.vmem %s38_s28, 64  ;;  %p947_p4 = scmp.lt.s32.totalorder %s38_s28, %s38_s28 }
   0xd   :  { %p943_p3 = scmp.ne.s32.totalorder %s38_s28, %s942_s16  ;;  %p948_p5 = scmp.lt.s32.totalorder %s942_s16, %s942_s16 }
   0xf   :  { %p949_p6 = por %p948_p5, %p947_p4 }
  0x11   :  { %p950_p7 = pnand %p949_p6, %p943_p3 }
  0x13   :  { %953 = shalt.err (!%p950_p7)
}
  0x14   :  { %40 = dma.hbm_to_vmem [thread:$0]  %s1369_s1, 64, %s38_s28, [#allocation10]  }
  0x15   :  { %s954_s21 = scalar_lea.hbm %s1368_s0, 512 }
  0x16   :  { %p955_p8 = scmp.ne.s32.totalorder %s1368_s0, %s954_s21  ;;  %p958_p9 = scmp.lt.u32.totalorder %s954_s21, %s1368_s0 }
  0x18   :  { %p960_p10 = pnand %p958_p9, %p955_p8 }
  0x1a   :  { %963 = shalt.err (!%p960_p10)
}
  0x1b   :  { %s964_s26 = scalar_lea.vmem %s1132_s30, 512  ;;  %p969_p12 = scmp.lt.s32.totalorder %s1132_s30, %s1132_s30 }
  0x1c   :  { %p965_p11 = scmp.ne.s32.totalorder %s1132_s30, %s964_s26  ;;  %p970_p13 = scmp.lt.s32.totalorder %s964_s26, %s964_s26 }
  0x1e   :  { %p971_p0 = por %p970_p13, %p969_p12 }
  0x20   :  { %p972_p1 = pnand %p971_p0, %p965_p11 }
  0x22   :  { %975 = shalt.err (!%p972_p1)
}
  0x23   :  { %s1076_s1 = smov 64   ;;  %s1077_s27 = smov 4  }
  0x24   :  { %30 = dma.hbm_to_vmem [thread:$0]  %s1368_s0, 512, %s1132_s30, [#allocation7], %s1076_s1, %s1076_s1, %s1077_s27  }
  0x25   :  { %s1078_s9 = smov [#allocation11]   ;;  %s1079_s11 = smov [#allocation12]  }
  0x26   :  { %s46_s10 = sshll.u32 %s1078_s9, 4  ;;  %s60_s12 = sshll.u32 %s1079_s11, 4  ;;  %s47_s10 = int_to_ptr.vmem [resolvable:$true] %s46_s10  ;;  %s1166_s12 = int_to_ptr.vmem [resolvable:$true] %s60_s12 }
  0x27   :  { %s976_s15 = scalar_lea.hbm %s1370_s2, 256 }
  0x28   :  { %p977_p2 = scmp.ne.s32.totalorder %s1370_s2, %s976_s15  ;;  %p980_p3 = scmp.lt.u32.totalorder %s976_s15, %s1370_s2 }
  0x2a   :  { %p982_p4 = pnand %p980_p3, %p977_p2 }
  0x2c   :  { %985 = shalt.err (!%p982_p4)
}
  0x2d   :  { %s986_s0 = scalar_lea.vmem %s47_s10, 256  ;;  %p991_p6 = scmp.lt.s32.totalorder %s47_s10, %s47_s10 }
  0x2e   :  { %p987_p5 = scmp.ne.s32.totalorder %s47_s10, %s986_s0  ;;  %p992_p7 = scmp.lt.s32.totalorder %s986_s0, %s986_s0 }
  0x30   :  { %p993_p8 = por %p992_p7, %p991_p6 }
  0x32   :  { %p994_p9 = pnand %p993_p8, %p987_p5 }
  0x34   :  { %997 = shalt.err (!%p994_p9)
}
  0x35   :  { %52 = dma.hbm_to_vmem [thread:$0]  %s1370_s2, 256, %s47_s10, [#allocation10], %s1076_s1, %s1076_s1, %s1077_s27  }
  0x36   :  { %s998_s23 = scalar_lea.hbm %s1372_s4, 256 }
  0x37   :  { %p999_p10 = scmp.ne.s32.totalorder %s1372_s4, %s998_s23  ;;  %p1002_p11 = scmp.lt.u32.totalorder %s998_s23, %s1372_s4 }
  0x39   :  { %p1004_p12 = pnand %p1002_p11, %p999_p10 }
  0x3b   :  { %1007 = shalt.err (!%p1004_p12)
}
  0x3c   :  { %s1008_s29 = scalar_lea.vmem %s1166_s12, 256  ;;  %p1013_p0 = scmp.lt.s32.totalorder %s1166_s12, %s1166_s12 }
  0x3d   :  { %p1009_p13 = scmp.ne.s32.totalorder %s1166_s12, %s1008_s29  ;;  %p1014_p1 = scmp.lt.s32.totalorder %s1008_s29, %s1008_s29 }
  0x3f   :  { %p1015_p2 = por %p1014_p1, %p1013_p0 }
  0x41   :  { %p1016_p3 = pnand %p1015_p2, %p1009_p13 }
  0x43   :  { %1019 = shalt.err (!%p1016_p3)
}
  0x44   :  { %66 = dma.hbm_to_vmem [thread:$0]  %s1372_s4, 256, %s1166_s12, [#allocation13], %s1076_s1, %s1076_s1, %s1077_s27  }
  0x45   :  { %1064 = dma.done.wait [#allocation7], 512  }
  0x46   :  { %1065 = vsyncadd [#allocation7], 4294966784 }
  0x47   :  { %1066 = dma.done.wait [#allocation10], 320  }
  0x48   :  { %1067 = vsyncadd [#allocation10], 4294966976 }
  0x49   :  { %1068 = dma.done.wait [#allocation13], 256  }
  0x4a   :  { %1069 = vsyncadd [#allocation13], 4294967040  ;;  %vm88_vm0 = vcmask 7168   ;;  %vm91_vm1 = vcmask 261120   ;;  %v1080_v0 = vmov 0.0   ;;  %vm1081_vm2 = vmmov 0  }
  0x4b   :  { %90 = vst.msk [vmem:[#allocation3] sm:$0xff] %vm88_vm0, %v1080_v0  ;;  %859 = vmatprep.subr.bf16.mxu1 %v1080_v0  ;;  %863 = vmatprep.mubr.msk.bf16.mxu1 %vm1081_vm2, %v1080_v0  ;;  %v882_v1 = vld [vmem:[#allocation11] sm:$0xff]   ;;  %v883_v2 = vld [vmem:[#allocation12] sm:$0xff]   ;;  %v884_v3 = vld [vmem:[#allocation11 + $0x8] sm:$0xff]   ;;  %v1082_v10 = vmov 1966171168   ;;  %v302_v12 = vlaneseq }
  0x4c   :  { %92 = vst.msk [vmem:[#allocation4] sm:$0xff] %vm91_vm1, %v1080_v0  ;;  %847 = vmatprep.subr.bf16.mxu0 %v882_v1  ;;  %860 = vmatpush3.bf16.msra.mxu1 %v883_v2  ;;  %v885_v4 = vld [vmem:[#allocation12 + $0x8] sm:$0xff]   ;;  %v1207_v6 = vld [vmem:[#allocation6 + $0x8] sm:$0xff]   ;;  %v1209_v7 = vld [vmem:[#allocation6 + $0x10] sm:$0xff]   ;;  %v300_v11 = vunpack.c.l.s4 %v1082_v10  ;;  %vm485_vm3 = vcmask 1041409   ;;  %vm487_vm4 = vcmask 1042434  }
  0x4d   :  { %848 = vmatpush3.bf16.msra.mxu0 %v882_v1  ;;  %861 = vmatprep.subr.bf16.mxu1 %v1080_v0  ;;  %v1205_v5 = vld [vmem:[#allocation6] sm:$0xff]   ;;  %v1218_v9 = vld [vmem:[#allocation6 + $0x18] sm:$0xff]   ;;  %v1223_v14 = vshrl.u32 %v302_v12, 7  ;;  %vm489_vm5 = vcmask 1043459   ;;  %vm491_vm6 = vcmask 1044484   ;;  %vm493_vm7 = vcmask 1045509  }
  0x4e   :  { %849 = vmatprep.subr.bf16.mxu0 %v884_v3  ;;  %v230_v8 = vld [vmem:[#allocation9] sm:$0xf]  ;;  %851 = vmatprep.mubr.msk.bf16.mxu0 %vm91_vm1, %v1205_v5  ;;  %v301_v13 = vunpack.c.0.s8 %v300_v11  ;;  %vm495_vm8 = vcmask 1046534   ;;  %vm497_vm9 = vcmask 1047559   ;;  %vm500_vm10 = vcmask 64512   ;;  %s1086_s12 = smov [#allocation15]  }
  0x4f   :  { %v833_v15 = vld [vmem:[%s1373_s5] ss:$0 sm:$0xff]  ;;  %v1233_v29 = vsub.s32 0, %v1223_v14  ;;  %s807_s13 = sshll.u32 %s1086_s12, 4  ;;  %s808_s13 = int_to_ptr.vmem [resolvable:$true] %s807_s13 }
  0x50   :  { %862 = vmatpush3.bf16.msra.mxu1 %v885_v4  ;;  %v304_v16 = vsub.s32 %v301_v13, %v1223_v14  ;;  %v832_v26 = vld [vmem:[%s1371_s3] ss:$0 sm:$0xff] }
  0x51   :  { %850 = vmatpush3.bf16.msra.mxu0 %v884_v3 }
  0x53   :  { %864 = vmatmul.mubr.msk.bf16.vlgmr.msra.gmra.mrb[0].mxu1 %vm91_vm1, %v230_v8  ;;  %v837_v8 = vld [vmem:[%s1374_s6] ss:$0 sm:$0xff]  ;;  %s1085_s6 = smov [#allocation14]  }
  0x54   :  { %852 = vmatmul.mubr.msk.bf16.vlgmr.msra.gmra.mrb[0].mxu0 %vm91_vm1, %v1207_v6  ;;  %s797_s11 = sshll.u32 %s1085_s6, 4  ;;  %s798_s11 = int_to_ptr.vmem [resolvable:$true] %s797_s11 }
  0x55   :  { %855 = vmatprep.mubr.msk.bf16.mxu0 %vm91_vm1, %v1209_v7  ;;  %s1020_s14 = scalar_lea.vmem %s798_s11, 128  ;;  %p1025_p5 = scmp.lt.s32.totalorder %s798_s11, %s798_s11 }
  0x56   :  { %p1021_p4 = scmp.ne.s32.totalorder %s798_s11, %s1020_s14  ;;  %p1026_p6 = scmp.lt.s32.totalorder %s1020_s14, %s1020_s14 }
  0x58   :  { %p1027_p7 = por %p1026_p6, %p1025_p5 }
  0x5a   :  { %p1028_p8 = pnand %p1027_p7, %p1021_p4 }
  0x5c   :  { %856 = vmatmul.mubr.msk.bf16.gmra.mrb[4].mxu0 %vm91_vm1, %v1218_v9 }
 0x126   :  { %v291_v17 = vpop.f32.mrb[0].mxu1 }
 0x127   :  { %v853_v18 = vpop.f32.mrb[0].mxu0  ;;  %v292_v19 = vadd.f32 %v833_v15, %v291_v17  ;;  %v865_v20 = vpop.f32.mrb[1].mxu1 }
 0x128   :  { %v184_v21 = vpop.f32.mrb[1].mxu0  ;;  %v294_v22 = vpop.f32.mrb[2].mxu1  ;;  %v224_v38 = vadd.f32 %v853_v18, %v832_v26 }
 0x129   :  { %v854_v23 = vpop.f32.mrb[2].mxu0  ;;  %v298_v24 = vcombine.high %v292_v19, %v292_v19  ;;  %v305_v25 = vrot.slane %v292_v19, %v304_v16  ;;  %v866_v27 = vpop.f32.mrb[3].mxu1  ;;  %v222_v33 = vadd.f32 %v832_v26, %v184_v21 }
 0x12a   :  { %v187_v28 = vpop.f32.mrb[3].mxu0  ;;  %v225_v53 = vadd.f32 %v854_v23, %v832_v26 }
 0x12b   :  { %v312_v30 = vrot.slane %v298_v24, %v304_v16  ;;  %v313_v31 = vcombine.high %v305_v25, %v305_v25  ;;  %v321_v32 = vrot.slane %v305_v25, %v304_v16  ;;  %v223_v40 = vadd.f32 %v832_v26, %v187_v28 }
 0x12d   :  { %v328_v34 = vrot.slane %v312_v30, %v304_v16  ;;  %v335_v35 = vrot.slane %v313_v31, %v304_v16  ;;  %v343_v36 = vcombine.high %v321_v32, %v321_v32  ;;  %v314_v37 = vcombine.high %v312_v30, %v312_v30 }
 0x12e   :  { %v350_v39 = vrot.slane %v321_v32, %v1233_v29 }
 0x12f   :  { %v857_v41 = vpop.f32.mrb[4].mxu0  ;;  %v358_v42 = vrot.slane %v343_v36, %v1233_v29  ;;  %v345_v43 = vcombine.high %v335_v35, %v335_v35  ;;  %v354_v44 = vrot.slane %v335_v35, %v1233_v29  ;;  %v344_v48 = vcombine.high %v328_v34, %v328_v34 }
 0x130   :  { %v228_v45 = vadd.f32 %v857_v41, %v832_v26  ;;  %v200_v46 = vpop.f32.mrb[5].mxu0  ;;  %v387_v47 = vadd.f32 %v350_v39, %v222_v33  ;;  %v366_v50 = vrot.slane %v328_v34, %v1233_v29  ;;  %v342_v59 = vrot.slane %v314_v37, %v304_v16 }
 0x131   :  { %v226_v49 = vadd.f32 %v832_v26, %v200_v46  ;;  %v858_v51 = vpop.f32.mrb[6].mxu0  ;;  %v389_v52 = vadd.f32 %v358_v42, %v224_v38  ;;  %v362_v54 = vrot.slane %v345_v43, %v1233_v29  ;;  %v388_v55 = vadd.f32 %v354_v44, %v223_v40 }
 0x132   :  { %v203_v56 = vpop.f32.mrb[7].mxu0  ;;  %894 = vtanh.f32 %v387_v47  ;;  %v374_v57 = vrot.slane %v344_v48, %v1233_v29  ;;  %v229_v61 = vadd.f32 %v858_v51, %v832_v26  ;;  %v346_v0 = vcombine.high %v342_v59, %v342_v59 }
 0x133   :  { %v391_v58 = vadd.f32 %v366_v50, %v226_v49  ;;  %896 = vtanh.f32 %v389_v52  ;;  %v390_v60 = vadd.f32 %v362_v54, %v225_v53  ;;  %v227_v62 = vadd.f32 %v832_v26, %v203_v56 }
 0x134   :  { %898 = vtanh.f32 %v388_v55  ;;  %v393_v63 = vadd.f32 %v374_v57, %v228_v45  ;;  %v370_v1 = vrot.slane %v342_v59, %v1233_v29  ;;  %v378_v2 = vrot.slane %v346_v0, %v1233_v29 }
 0x135   :  { %900 = vtanh.f32 %v390_v60  ;;  %v1083_v37 = vmov -inf   ;;  %v452_v38 = vand.u32 127, %v302_v12 }
 0x136   :  { %v392_v3 = vadd.f32 %v370_v1, %v227_v62  ;;  %902 = vtanh.f32 %v391_v58  ;;  %v394_v4 = vadd.f32 %v378_v2, %v229_v61  ;;  %89 = vst.msk [vmem:[#allocation2] sm:$0xff] %vm88_vm0, %v1083_v37 }
 0x137   :  { %v1257_v40 = vsub.s32 %v452_v38, %v1223_v14 }
 0x138   :  { %904 = vtanh.f32 %v392_v3 }
 0x139   :  { %906 = vtanh.f32 %v393_v63  ;;  %v1084_v63 = vmov 0  }
 0x13a   :  { %908 = vtanh.f32 %v394_v4  ;;  %880 = vset.pattern.permute.xlu1 %v1084_v63  ;;  %881 = vset.pattern.permute.xlu0 %v1084_v63  ;;  %v518_v4 = vsub.s32 1, %v1223_v14 }
 0x13c   :  { %v895_v10 = vpop.eup %894 }
 0x13d   :  { %v897_v11 = vpop.eup %896  ;;  %v410_v13 = vmul.f32 %v895_v10, %v837_v8  ;;  %v442_v0 = vld [vmem:[#allocation2] sm:$0xff]  ;;  %v526_v10 = vsub.s32 3, %v1223_v14 }
 0x13e   :  { %v899_v15 = vpop.eup %898  ;;  %v412_v16 = vmul.f32 %v897_v11, %v837_v8 }
 0x13f   :  { %v901_v17 = vpop.eup %900  ;;  %v418_v18 = vsel %vm91_vm1, %v410_v13, 0.0  ;;  %v411_v19 = vmul.f32 %v899_v15, %v837_v8 }
 0x140   :  { %419 = vadd.xlane.f32.xlu0 %v418_v18  ;;  %v424_v20 = vsel %vm91_vm1, %v412_v16, 0.0  ;;  %v413_v21 = vmul.f32 %v901_v17, %v837_v8  ;;  %v903_v22 = vpop.eup %902 }
 0x141   :  { %425 = vadd.xlane.f32.xlu1 %v424_v20  ;;  %v421_v24 = vsel %vm91_vm1, %v411_v19, 0.0  ;;  %v414_v25 = vmul.f32 %v903_v22, %v837_v8  ;;  %v530_v19 = vsub.s32 4, %v1223_v14 }
 0x142   :  { %v905_v23 = vpop.eup %904  ;;  %v427_v27 = vsel %vm91_vm1, %v413_v21, 0.0 }
 0x143   :  { %v907_v26 = vpop.eup %906  ;;  %v415_v28 = vmul.f32 %v905_v23, %v837_v8  ;;  %v430_v31 = vsel %vm91_vm1, %v414_v25, 0.0 }
 0x144   :  { %422 = vadd.xlane.f32.xlu0 %v421_v24  ;;  %v909_v30 = vpop.eup %908  ;;  %v416_v32 = vmul.f32 %v907_v26, %v837_v8  ;;  %v534_v24 = vsub.s32 5, %v1223_v14 }
 0x145   :  { %428 = vadd.xlane.f32.xlu1 %v427_v27  ;;  %v433_v33 = vsel %vm91_vm1, %v415_v28, 0.0  ;;  %v417_v34 = vmul.f32 %v909_v30, %v837_v8  ;;  %v522_v8 = vsub.s32 2, %v1223_v14 }
 0x146   :  { %v436_v35 = vsel %vm91_vm1, %v416_v32, 0.0 }
 0x147   :  { %v439_v36 = vsel %vm91_vm1, %v417_v34, 0.0 }
 0x148   :  { %431 = vadd.xlane.f32.xlu0 %v430_v31 }
 0x149   :  { %434 = vadd.xlane.f32.xlu1 %v433_v33  ;;  %v542_v33 = vsub.s32 7, %v1223_v14 }
 0x14c   :  { %437 = vadd.xlane.f32.xlu0 %v436_v35 }
 0x14d   :  { %440 = vadd.xlane.f32.xlu1 %v439_v36 }
 0x1cd   :  { %v420_v39 = vpop.xlane.xlu0 %419 }
 0x1ce   :  { %v426_v41 = vpop.xlane.xlu1 %425  ;;  %v456_v43 = vrot.slane %v420_v39, %v1257_v40 }
 0x1cf   :  { %v464_v46 = vrot.slane %v426_v41, %v1257_v40 }
 0x1d1   :  { %v423_v42 = vpop.xlane.xlu0 %422 }
 0x1d2   :  { %v460_v44 = vrot.slane %v423_v42, %v1257_v40  ;;  %v429_v45 = vpop.xlane.xlu1 %428 }
 0x1d3   :  { %v468_v47 = vrot.slane %v429_v45, %v1257_v40 }
 0x1d4   :  { %v486_v12 = vsel %vm485_vm3, %v460_v44, %v456_v43 }
 0x1d5   :  { %v488_v48 = vsel %vm487_vm4, %v464_v46, %v486_v12  ;;  %v432_v49 = vpop.xlane.xlu0 %431 }
 0x1d6   :  { %v490_v50 = vsel %vm489_vm5, %v468_v47, %v488_v48  ;;  %v472_v51 = vrot.slane %v432_v49, %v1257_v40  ;;  %v1267_v52 = vpop.xlane.xlu1 %434 }
 0x1d7   :  { %v476_v53 = vrot.slane %v1267_v52, %v1257_v40 }
 0x1d8   :  { %v492_v54 = vsel %vm491_vm6, %v472_v51, %v490_v50 }
 0x1d9   :  { %v1272_v55 = vpop.xlane.xlu0 %437  ;;  %v494_v56 = vsel %vm493_vm7, %v476_v53, %v492_v54  ;;  %v664_v53 = vunpack.c.h.bf16 %v1205_v5 }
 0x1da   :  { %v480_v57 = vrot.slane %v1272_v55, %v1257_v40  ;;  %v1277_v58 = vpop.xlane.xlu1 %440 }
 0x1db   :  { %v484_v59 = vrot.slane %v1277_v58, %v1257_v40 }
 0x1dc   :  { %v496_v60 = vsel %vm495_vm8, %v480_v57, %v494_v56  ;;  %v665_v57 = vunpack.c.l.bf16 %v1207_v6 }
 0x1dd   :  { %v498_v61 = vsel %vm497_vm9, %v484_v59, %v496_v60 }
 0x1de   :  { %v501_v62 = vsel %vm500_vm10, %v498_v61, -inf  ;;  %764 = vst.msk [vmem:[#allocation5] sm:$0xff] %vm500_vm10, %v498_v61 }
 0x1df   :  { %502 = vmax.xlane.f32.xlu0 %v501_v62  ;;  %v666_v62 = vunpack.c.h.bf16 %v1207_v6 }
 0x26c   :  { %v503_v1 = vpop.xlane.xlu0 %502 }
 0x26d   :  { %v504_v2 = vmax.f32 %v442_v0, %v503_v1 }
 0x26f   :  { %v505_v3 = vsub.f32 %v442_v0, %v504_v2  ;;  %761 = vst.msk [vmem:[#allocation2] sm:$0xff] %vm88_vm0, %v504_v2  ;;  %510 = vperm.xlu1 %880, %v504_v2  }
 0x271   :  { %v506_v28 = vmul.f32 1.442695, %v505_v3 }
 0x276   :  { %v771_v43 = vld [vmem:[#allocation2] sm:$0xff] }
 0x2ee   :  { %v511_v11 = vpop.permute.xlu1 %510 }
 0x2ef   :  { %v515_v13 = vrot.slane %v511_v11, %v1233_v29  ;;  %v519_v15 = vrot.slane %v511_v11, %v518_v4  ;;  %v523_v16 = vrot.slane %v511_v11, %v522_v8  ;;  %v527_v20 = vrot.slane %v511_v11, %v526_v10 }
 0x2f0   :  { %v531_v25 = vrot.slane %v511_v11, %v530_v19  ;;  %v538_v29 = vsub.s32 6, %v1223_v14  ;;  %v535_v30 = vrot.slane %v511_v11, %v534_v24 }
 0x2f1   :  { %v552_v17 = vsub.f32 %v420_v39, %v515_v13  ;;  %v553_v18 = vsub.f32 %v423_v42, %v519_v15  ;;  %v554_v21 = vsub.f32 %v426_v41, %v523_v16  ;;  %v555_v26 = vsub.f32 %v429_v45, %v527_v20 }
 0x2f2   :  { %v556_v31 = vsub.f32 %v432_v49, %v531_v25  ;;  %v539_v34 = vrot.slane %v511_v11, %v538_v29  ;;  %v557_v35 = vsub.f32 %v1267_v52, %v535_v30  ;;  %v543_v39 = vrot.slane %v511_v11, %v542_v33 }
 0x2f3   :  { %v560_v22 = vmul.f32 1.442695, %v552_v17  ;;  %v562_v23 = vmul.f32 1.442695, %v553_v18  ;;  %v564_v27 = vmul.f32 1.442695, %v554_v21  ;;  %v663_v52 = vunpack.c.l.bf16 %v1205_v5 }
 0x2f4   :  { %v566_v32 = vmul.f32 1.442695, %v555_v26  ;;  %v568_v36 = vmul.f32 1.442695, %v556_v31  ;;  %v558_v41 = vsub.f32 %v1272_v55, %v539_v34  ;;  %v570_v42 = vmul.f32 1.442695, %v557_v35 }
 0x2f5   :  { %910 = vpow2.f32 %v560_v22  ;;  %v559_v14 = vsub.f32 %v1277_v58, %v543_v39  ;;  %v667_v5 = vunpack.c.l.bf16 %v1209_v7  ;;  %v668_v17 = vunpack.c.h.bf16 %v1209_v7 }
 0x2f6   :  { %912 = vpow2.f32 %v562_v23  ;;  %v572_v45 = vmul.f32 1.442695, %v558_v41 }
 0x2f7   :  { %914 = vpow2.f32 %v564_v27  ;;  %v574_v12 = vmul.f32 1.442695, %v559_v14  ;;  %v669_v27 = vunpack.c.l.bf16 %v1218_v9 }
 0x2f8   :  { %916 = vpow2.f32 %v506_v28 }
 0x2f9   :  { %918 = vpow2.f32 %v566_v32 }
 0x2fa   :  { %920 = vpow2.f32 %v568_v36 }
 0x2fb   :  { %922 = vpow2.f32 %v570_v42 }
 0x2fc   :  { %924 = vpow2.f32 %v572_v45 }
 0x2fd   :  { %926 = vpow2.f32 %v574_v12 }
 0x2ff   :  { %v911_v37 = vpop.eup %910 }
 0x300   :  { %v913_v38 = vpop.eup %912  ;;  %587 = vperm.xlu0 %881, %v911_v37  }
 0x301   :  { %590 = vperm.xlu1 %880, %v913_v38   ;;  %v915_v44 = vpop.eup %914  ;;  %v670_v38 = vunpack.c.h.bf16 %v1218_v9 }
 0x302   :  { %v1297_v46 = vpop.eup %916 }
 0x303   :  { %v919_v47 = vpop.eup %918 }
 0x304   :  { %775 = vperm.xlu0 %881, %v771_v43   ;;  %v921_v48 = vpop.eup %920 }
 0x305   :  { %593 = vperm.xlu1 %880, %v915_v44   ;;  %v923_v49 = vpop.eup %922 }
 0x306   :  { %v925_v50 = vpop.eup %924 }
 0x307   :  { %v927_v51 = vpop.eup %926 }
 0x308   :  { %659 = vperm.xlu0 %881, %v1297_v46  }
 0x309   :  { %596 = vperm.xlu1 %880, %v919_v47  }
 0x30d   :  { %599 = vperm.xlu1 %880, %v921_v48  }
 0x311   :  { %602 = vperm.xlu1 %880, %v923_v49  }
 0x315   :  { %605 = vperm.xlu1 %880, %v925_v50  }
 0x319   :  { %608 = vperm.xlu1 %880, %v927_v51  }
 0x37f   :  { %v588_v54 = vpop.permute.xlu0 %587 }
 0x380   :  { %v591_v55 = vpop.permute.xlu1 %590  ;;  %v679_v56 = vmul.f32 %v663_v52, %v588_v54  ;;  %v613_v25 = vrot.slane %v588_v54, %v1257_v40 }
 0x381   :  { %v680_v58 = vmul.f32 %v664_v53, %v591_v55  ;;  %v617_v24 = vrot.slane %v591_v55, %v1257_v40 }
 0x382   :  { %v687_v59 = vsel %vm91_vm1, %v679_v56, 0.0 }
 0x383   :  { %v694_v63 = vsel %vm91_vm1, %v680_v58, 0.0  ;;  %v688_v0 = vrot.slane %v687_v59, 4  ;;  %v642_v39 = vsel %vm485_vm3, %v617_v24, %v613_v25 }
 0x384   :  { %v594_v60 = vpop.permute.xlu1 %593  ;;  %v695_v4 = vrot.slane %v694_v63, 4 }
 0x385   :  { %v681_v61 = vmul.f32 %v665_v57, %v594_v60  ;;  %v689_v8 = vadd.f32 %v688_v0, %v687_v59  ;;  %v621_v29 = vrot.slane %v594_v60, %v1257_v40 }
 0x386   :  { %v696_v6 = vadd.f32 %v695_v4, %v694_v63 }
 0x387   :  { %v701_v1 = vsel %vm91_vm1, %v681_v61, 0.0  ;;  %v690_v18 = vrot.slane %v689_v8, 2  ;;  %v643_v14 = vsel %vm487_vm4, %v621_v29, %v642_v39 }
 0x388   :  { %v597_v2 = vpop.permute.xlu1 %596  ;;  %v702_v10 = vrot.slane %v701_v1, 4  ;;  %v697_v28 = vrot.slane %v696_v6, 2 }
 0x389   :  { %v682_v3 = vmul.f32 %v666_v62, %v597_v2  ;;  %v691_v7 = vadd.f32 %v690_v18, %v689_v8  ;;  %v625_v32 = vrot.slane %v597_v2, %v1257_v40 }
 0x38a   :  { %v703_v19 = vadd.f32 %v702_v10, %v701_v1  ;;  %v698_v44 = vadd.f32 %v697_v28, %v696_v6 }
 0x38b   :  { %v708_v11 = vsel %vm91_vm1, %v682_v3, 0.0  ;;  %v692_v12 = vrot.slane %v691_v7, 1  ;;  %v644_v49 = vsel %vm489_vm5, %v625_v32, %v643_v14 }
 0x38c   :  { %v709_v13 = vrot.slane %v708_v11, 4  ;;  %v600_v15 = vpop.permute.xlu1 %599  ;;  %v704_v31 = vrot.slane %v703_v19, 2  ;;  %v699_v59 = vrot.slane %v698_v44, 1 }
 0x38d   :  { %v683_v16 = vmul.f32 %v667_v5, %v600_v15  ;;  %v629_v35 = vrot.slane %v600_v15, %v1257_v40  ;;  %v693_v4 = vadd.f32 %v692_v12, %v691_v7 }
 0x38e   :  { %v710_v21 = vadd.f32 %v709_v13, %v708_v11  ;;  %v705_v48 = vadd.f32 %v704_v31, %v703_v19  ;;  %v700_v10 = vadd.f32 %v699_v59, %v698_v44  ;;  %v776_v11 = vpop.permute.xlu0 %775 }
 0x38f   :  { %v715_v20 = vsel %vm91_vm1, %v683_v16, 0.0  ;;  %v645_v9 = vsel %vm491_vm6, %v629_v35, %v644_v49 }
 0x390   :  { %v716_v22 = vrot.slane %v715_v20, 4  ;;  %v603_v23 = vpop.permute.xlu1 %602  ;;  %v711_v34 = vrot.slane %v710_v21, 2  ;;  %v706_v63 = vrot.slane %v705_v48, 1 }
 0x391   :  { %v684_v26 = vmul.f32 %v668_v17, %v603_v23  ;;  %v633_v42 = vrot.slane %v603_v23, %v1257_v40 }
 0x392   :  { %v717_v30 = vadd.f32 %v716_v22, %v715_v20  ;;  %v712_v51 = vadd.f32 %v711_v34, %v710_v21  ;;  %v707_v17 = vadd.f32 %v706_v63, %v705_v48  ;;  %v751_v21 = vsel %vm485_vm3, %v700_v10, %v693_v4  ;;  %v660_v28 = vpop.permute.xlu0 %659 }
 0x393   :  { %v722_v33 = vsel %vm91_vm1, %v684_v26, 0.0  ;;  %v646_v58 = vsel %vm493_vm7, %v633_v42, %v645_v9 }
 0x394   :  { %v723_v36 = vrot.slane %v722_v33, 4  ;;  %v606_v37 = vpop.permute.xlu1 %605  ;;  %v718_v41 = vrot.slane %v717_v30, 2  ;;  %v713_v2 = vrot.slane %v712_v51, 1  ;;  %v752_v24 = vsel %vm487_vm4, %v707_v17, %v751_v21 }
 0x395   :  { %v685_v43 = vmul.f32 %v669_v27, %v606_v37  ;;  %v637_v47 = vrot.slane %v606_v37, %v1257_v40  ;;  %v656_v27 = vld [vmem:[#allocation4] sm:$0xff] }
 0x396   :  { %v724_v45 = vadd.f32 %v723_v36, %v722_v33  ;;  %v719_v55 = vadd.f32 %v718_v41, %v717_v30  ;;  %v714_v6 = vadd.f32 %v713_v2, %v712_v51  ;;  %v662_v32 = vmul.f32 %v660_v28, %v656_v27  ;;  %v576_v36 = vld [vmem:[#allocation3] sm:$0xff] }
 0x397   :  { %v729_v50 = vsel %vm91_vm1, %v685_v43, 0.0  ;;  %v647_v62 = vsel %vm495_vm8, %v637_v47, %v646_v58  ;;  %v577_v37 = vmul.f32 %v1297_v46, %v576_v36  ;;  %v772_v43 = vld [vmem:[#allocation5] sm:$0xff] }
 0x398   :  { %v725_v52 = vrot.slane %v724_v45, 2  ;;  %v730_v53 = vrot.slane %v729_v50, 4  ;;  %v609_v54 = vpop.permute.xlu1 %608  ;;  %v720_v8 = vrot.slane %v719_v55, 1  ;;  %v753_v26 = vsel %vm489_vm5, %v714_v6, %v752_v24 }
 0x399   :  { %v641_v56 = vrot.slane %v609_v54, %v1257_v40  ;;  %v686_v57 = vmul.f32 %v670_v38, %v609_v54  ;;  %v778_v44 = vsub.f32 %v772_v43, %v776_v11 }
 0x39a   :  { %v726_v60 = vadd.f32 %v725_v52, %v724_v45  ;;  %v731_v61 = vadd.f32 %v730_v53, %v729_v50  ;;  %v721_v20 = vadd.f32 %v720_v8, %v719_v55 }
 0x39b   :  { %v736_v0 = vsel %vm91_vm1, %v686_v57, 0.0  ;;  %v648_v1 = vsel %vm497_vm9, %v641_v56, %v647_v62  ;;  %v779_v14 = vmul.f32 1.442695, %v778_v44 }
 0x39c   :  { %v732_v3 = vrot.slane %v731_v61, 2  ;;  %v737_v5 = vrot.slane %v736_v0, 4  ;;  %v650_v40 = vsel %vm500_vm10, %v648_v1, 0.0  ;;  %v727_v13 = vrot.slane %v726_v60, 1 }
 0x39d   :  { %651 = vadd.xlane.f32.xlu1 %v650_v40  ;;  %v754_v30 = vsel %vm491_vm6, %v721_v20, %v753_v26 }
 0x39e   :  { %v733_v15 = vadd.f32 %v732_v3, %v731_v61  ;;  %v738_v16 = vadd.f32 %v737_v5, %v736_v0  ;;  %v728_v22 = vadd.f32 %v727_v13, %v726_v60 }
 0x3a0   :  { %v734_v18 = vrot.slane %v733_v15, 1  ;;  %v739_v19 = vrot.slane %v738_v16, 2  ;;  %v755_v7 = vsel %vm493_vm7, %v728_v22, %v754_v30 }
 0x3a2   :  { %v740_v23 = vadd.f32 %v739_v19, %v738_v16  ;;  %v735_v25 = vadd.f32 %v734_v18, %v733_v15 }
 0x3a4   :  { %v741_v29 = vrot.slane %v740_v23, 1  ;;  %v756_v33 = vsel %vm495_vm8, %v735_v25, %v755_v7 }
 0x3a6   :  { %v742_v31 = vadd.f32 %v741_v29, %v740_v23 }
 0x3a8   :  { %v757_v34 = vsel %vm497_vm9, %v742_v31, %v756_v33 }
 0x3a9   :  { %v759_v35 = vadd.f32 %v757_v34, %v662_v32 }
 0x3ab   :  { %760 = vst.msk [vmem:[#allocation4] sm:$0xff] %vm91_vm1, %v759_v35 }
 0x3b2   :  { %v788_v47 = vld [vmem:[#allocation4] sm:$0xff] }
 0x42a   :  { %v652_v38 = vpop.xlane.xlu1 %651 }
 0x42b   :  { %v653_v39 = vadd.f32 %v652_v38, %v577_v37 }
 0x42d   :  { %655 = vst.msk [vmem:[#allocation3] sm:$0xff] %vm88_vm0, %v653_v39 }
 0x434   :  { %v768_v41 = vld [vmem:[#allocation3] sm:$0xff] }
 0x435   :  { %928 = vrcp.f32 %v768_v41 }
 0x436   :  { %930 = vpow2.f32 %v779_v14 }
 0x43f   :  { %v929_v42 = vpop.eup %928 }
 0x440   :  { %783 = vperm.xlu0 %881, %v929_v42   ;;  %v931_v45 = vpop.eup %930 }
 0x4bf   :  { %v784_v12 = vpop.permute.xlu0 %783 }
 0x4c0   :  { %v786_v46 = vmul.f32 %v931_v45, %v784_v12  ;;  %v789_v48 = vmul.f32 %v788_v47, %v784_v12 }
 0x4c2   :  { %787 = vst.msk [vmem:[#allocation14] sm:$0xff] %vm500_vm10, %v786_v46 }
 0x4c3   :  { %790 = vst.msk [vmem:[#allocation15] sm:$0xff] %vm91_vm1, %v789_v48 }
 0x4c4   :  { %1031 = shalt.err (!%p1028_p8)
}
 0x4c5   :  { %s1032_s17 = scalar_lea.hbm %s1375_s7, 128 }
 0x4c6   :  { %p1033_p9 = scmp.ne.s32.totalorder %s1375_s7, %s1032_s17  ;;  %p1036_p10 = scmp.lt.u32.totalorder %s1032_s17, %s1375_s7 }
 0x4c8   :  { %p1038_p11 = pnand %p1036_p10, %p1033_p9 }
 0x4ca   :  { %1041 = shalt.err (!%p1038_p11)
}
 0x4cb   :  { %800 = dma.vmem_to_hbm [thread:$0]  %s798_s11, 128, %s1375_s7, [#allocation8]  }
 0x4cc   :  { %s1042_s22 = scalar_lea.vmem %s808_s13, 128  ;;  %p1047_p13 = scmp.lt.s32.totalorder %s808_s13, %s808_s13 }
 0x4cd   :  { %p1043_p12 = scmp.ne.s32.totalorder %s808_s13, %s1042_s22  ;;  %p1048_p0 = scmp.lt.s32.totalorder %s1042_s22, %s1042_s22 }
 0x4cf   :  { %p1049_p1 = por %p1048_p0, %p1047_p13 }
 0x4d1   :  { %p1050_p2 = pnand %p1049_p1, %p1043_p12 }
 0x4d3   :  { %1053 = shalt.err (!%p1050_p2)
}
 0x4d4   :  { %s1054_s25 = scalar_lea.hbm %s1376_s8, 128 }
 0x4d5   :  { %p1055_p3 = scmp.ne.s32.totalorder %s1376_s8, %s1054_s25  ;;  %p1058_p4 = scmp.lt.u32.totalorder %s1054_s25, %s1376_s8 }
 0x4d7   :  { %p1060_p5 = pnand %p1058_p4, %p1055_p3 }
 0x4d9   :  { %1063 = shalt.err (!%p1060_p5)
}
 0x4da   :  { %810 = dma.vmem_to_hbm [thread:$0]  %s808_s13, 128, %s1376_s8, [#allocation16]  }
 0x4db   :  { %1070 = dma.done.wait [#allocation8], 128  }
 0x4dc   :  { %1071 = vsyncadd [#allocation8], 4294967168 }
 0x4dd   :  { %1072 = dma.done.wait [#allocation16], 128  }
 0x4de   :  { %1073 = vsyncadd [#allocation16], 4294967168 }
 0x4df   :  { %817 = vsyncpa [#allocation7], 1 }
 0x4e0   :  { %818 = vsyncpa [#allocation10], 1 }
 0x4e1   :  { %819 = vsyncpa [#allocation13], 1 }
 0x4e2   :  { %820 = vsyncpa [#allocation8], 1 }
 0x4e3   :  { %821 = vsyncpa [#allocation16], 1 }

</bundles_post_ra>
